<compile_context>
chip_gen: v7x
topology: tpu7x:2x2x1
jax: 0.10.0
libtpu: 0.0.40
codegen_flags: <defaults>
</compile_context>

<pallas_src>
import jax
import jax.numpy as jnp
import numpy as np
from jax.experimental import pallas as pl
from jax.experimental.pallas import tpu as pltpu


def residual_net_kernel(x_ref, w1_ref, b1_ref, w2_ref, b2_ref, o_ref):
    x = x_ref[...]                                  # (tb, D_in) f32
    # mod(x): Linear -> ReLU -> Linear.  bf16 MXU operands, f32 accumulation.
    x_bf = x.astype(jnp.bfloat16)
    h = jnp.dot(x_bf, w1_ref[...], preferred_element_type=jnp.float32)  # (tb, H)
    h = jnp.maximum(h + b1_ref[...], 0.0)           # bias + ReLU in f32
    m = jnp.dot(h.astype(jnp.bfloat16), w2_ref[...],
                preferred_element_type=jnp.float32)                     # (tb, D_out)
    m = m + b2_ref[...]
    # residual: 0.1 * M + x[:, :D_out], done fully in f32.
    d_out = o_ref.shape[-1]
    o_ref[...] = (0.1 * m + x[:, :d_out]).astype(o_ref.dtype)


def _pick_tb(batch):
    # Large enough to fill the MXU, small enough that the f32 intermediates
    # don't force heavy spilling (review: knee around 256).
    if batch <= 256:
        return batch
    for cand in (256, 128):
        if batch % cand == 0:
            return cand
    return 256  # will pad the batch below


def residual_net(x, w1, b1, w2, b2, *, tb=None):
    B, D_in = x.shape
    H = w1.shape[1]
    D_out = w2.shape[1]
    assert D_out <= D_in, "residual slice x[:, :D_out] requires D_out <= D_in"
    # TODO(synk): if D_out is not a multiple of 128, pad the output feature
    # dim in the wrapper to keep lane-dense (unmasked) stores.

    if tb is None:
        tb = _pick_tb(B)
    # Pad the batch so the grid divides evenly (zeros are harmless, sliced off).
    B_pad = ((B + tb - 1) // tb) * tb
    x_in = jnp.pad(x, ((0, B_pad - B), (0, 0))) if B_pad != B else x

    # Weights to bf16 for the MXU; biases stay f32 (elementwise tail is f32).
    w1_bf = w1.astype(jnp.bfloat16)
    w2_bf = w2.astype(jnp.bfloat16)

    grid = (B_pad // tb,)
    out = pl.pallas_call(
        residual_net_kernel,
        out_shape=jax.ShapeDtypeStruct((B_pad, D_out), x.dtype),
        grid_spec=pltpu.PrefetchScalarGridSpec(
            num_scalar_prefetch=0,
            grid=grid,
            in_specs=[
                pl.BlockSpec((tb, D_in), lambda i: (i, 0)),   # x tile (f32)
                pl.BlockSpec((D_in, H), lambda i: (0, 0)),    # W1 (bf16, resident)
                pl.BlockSpec((1, H), lambda i: (0, 0)),       # b1 (f32, resident)
                pl.BlockSpec((H, D_out), lambda i: (0, 0)),   # W2 (bf16, resident)
                pl.BlockSpec((1, D_out), lambda i: (0, 0)),   # b2 (f32, resident)
            ],
            out_specs=pl.BlockSpec((tb, D_out), lambda i: (i, 0)),
        ),
        compiler_params=pltpu.CompilerParams(
            dimension_semantics=("parallel",)
        ),
    )(x_in, w1_bf, b1, w2_bf, b2)
    return out[:B] if B_pad != B else out


def residual_net_ref(x, w1, b1, w2, b2):
    # Reference with the same mixed-precision recipe (bf16 matmul operands,
    # f32 accumulation, f32 residual) so the comparison is apples-to-apples.
    x_bf = x.astype(jnp.bfloat16)
    w1_bf = w1.astype(jnp.bfloat16)
    w2_bf = w2.astype(jnp.bfloat16)
    h = jnp.maximum(
        jnp.dot(x_bf, w1_bf, preferred_element_type=jnp.float32) + b1, 0.0)
    m = jnp.dot(h.astype(jnp.bfloat16), w2_bf,
                preferred_element_type=jnp.float32) + b2
    return 0.1 * m + x[:, : m.shape[1]]


if __name__ == "__main__":
    # Small but tile-friendly shapes: batch=256, in=256, hidden=128, out=128.
    # tb=128 -> grid=(2,) so v7x's two TensorCores both get work.
    B, D_in, H, D_out = 256, 256, 128, 128
    TB = 128

    key = jax.random.PRNGKey(0)
    k_x, k_w1, k_b1, k_w2, k_b2 = jax.random.split(key, 5)

    x = jax.random.normal(k_x, (B, D_in), dtype=jnp.float32)
    # Deterministic "Linear"-style init (uniform, fan-in scaled).
    w1 = jax.random.uniform(k_w1, (D_in, H), jnp.float32,
                            -1.0 / np.sqrt(D_in), 1.0 / np.sqrt(D_in))
    b1 = jax.random.uniform(k_b1, (1, H), jnp.float32,
                            -1.0 / np.sqrt(D_in), 1.0 / np.sqrt(D_in))
    w2 = jax.random.uniform(k_w2, (H, D_out), jnp.float32,
                            -1.0 / np.sqrt(H), 1.0 / np.sqrt(H))
    b2 = jax.random.uniform(k_b2, (1, D_out), jnp.float32,
                            -1.0 / np.sqrt(H), 1.0 / np.sqrt(H))

    out = jax.block_until_ready(residual_net(x, w1, b1, w2, b2, tb=TB))
    ref = jax.block_until_ready(residual_net_ref(x, w1, b1, w2, b2))
    np.testing.assert_allclose(np.asarray(out), np.asarray(ref),
                               rtol=1e-3, atol=1e-3)

    # Also exercise the ragged-batch padding path once.
    out_ragged = jax.block_until_ready(
        residual_net(x[: B - 3], w1, b1, w2, b2, tb=TB))
    np.testing.assert_allclose(np.asarray(out_ragged), np.asarray(ref[: B - 3]),
                               rtol=1e-3, atol=1e-3)

    print("KERNEL_OK")
</pallas_src>

<mosaic_0001>
module attributes {stable_mosaic.version = 11 : i64} {
  func.func @residual_net_kernel(%arg0: i32, %arg1: memref<128x256xf32, #tpu.memory_space<vmem>>, %arg2: memref<256x128xbf16, #tpu.memory_space<vmem>>, %arg3: memref<1x128xf32, #tpu.memory_space<vmem>>, %arg4: memref<128x128xbf16, #tpu.memory_space<vmem>>, %arg5: memref<1x128xf32, #tpu.memory_space<vmem>>, %arg6: memref<128x128xf32, #tpu.memory_space<vmem>>) attributes {dimension_semantics = [#tpu.dimension_semantics<parallel>], iteration_bounds = array<i64: 2>, scalar_prefetch = 0 : i64, scratch_operands = 0 : i64, tpu.core_type = #tpu.core_type<tc>, window_params = [{transform_indices = @transform_0, window_bounds = array<i64: 128, 256>}, {pipeline_mode = #tpu.pipeline_mode<synchronous>, transform_indices = @transform_1, window_bounds = array<i64: 256, 128>}, {pipeline_mode = #tpu.pipeline_mode<synchronous>, transform_indices = @transform_2, window_bounds = array<i64: 1, 128>}, {pipeline_mode = #tpu.pipeline_mode<synchronous>, transform_indices = @transform_3, window_bounds = array<i64: 128, 128>}, {pipeline_mode = #tpu.pipeline_mode<synchronous>, transform_indices = @transform_4, window_bounds = array<i64: 1, 128>}, {transform_indices = @transform_5, window_bounds = array<i64: 128, 128>}]} {
    %c0 = arith.constant 0 : index
    %c0_0 = arith.constant 0 : index
    %0 = vector.load %arg1[%c0, %c0_0] : memref<128x256xf32, #tpu.memory_space<vmem>>, vector<128x256xf32>
    %1 = arith.truncf %0 : vector<128x256xf32> to vector<128x256xbf16>
    %c0_1 = arith.constant 0 : index
    %c0_2 = arith.constant 0 : index
    %2 = vector.load %arg2[%c0_1, %c0_2] : memref<256x128xbf16, #tpu.memory_space<vmem>>, vector<256x128xbf16>
    %cst = arith.constant dense<0.000000e+00> : vector<128x128xf32>
    %3 = tpu.matmul %1, %2, %cst {dimension_numbers = #tpu.dot_dimension_numbers<[1], [0], [0], [1], [0, 0, 1, 1], [], []>} : vector<128x256xbf16>, vector<256x128xbf16>, vector<128x128xf32> -> vector<128x128xf32>
    %c0_3 = arith.constant 0 : index
    %c0_4 = arith.constant 0 : index
    %4 = vector.load %arg3[%c0_3, %c0_4] : memref<1x128xf32, #tpu.memory_space<vmem>>, vector<1x128xf32>
    %5 = vector.broadcast %4 : vector<1x128xf32> to vector<128x128xf32>
    %6 = arith.addf %3, %5 : vector<128x128xf32>
    %cst_5 = arith.constant 0.000000e+00 : f32
    %7 = vector.broadcast %cst_5 : f32 to vector<128x128xf32>
    %8 = arith.maximumf %6, %7 : vector<128x128xf32>
    %9 = arith.truncf %8 : vector<128x128xf32> to vector<128x128xbf16>
    %c0_6 = arith.constant 0 : index
    %c0_7 = arith.constant 0 : index
    %10 = vector.load %arg4[%c0_6, %c0_7] : memref<128x128xbf16, #tpu.memory_space<vmem>>, vector<128x128xbf16>
    %cst_8 = arith.constant dense<0.000000e+00> : vector<128x128xf32>
    %11 = tpu.matmul %9, %10, %cst_8 {dimension_numbers = #tpu.dot_dimension_numbers<[1], [0], [0], [1], [0, 0, 1, 1], [], []>} : vector<128x128xbf16>, vector<128x128xbf16>, vector<128x128xf32> -> vector<128x128xf32>
    %c0_9 = arith.constant 0 : index
    %c0_10 = arith.constant 0 : index
    %12 = vector.load %arg5[%c0_9, %c0_10] : memref<1x128xf32, #tpu.memory_space<vmem>>, vector<1x128xf32>
    %13 = vector.broadcast %12 : vector<1x128xf32> to vector<128x128xf32>
    %14 = arith.addf %11, %13 : vector<128x128xf32>
    %cst_11 = arith.constant 1.000000e-01 : f32
    %15 = vector.broadcast %cst_11 : f32 to vector<128x128xf32>
    %16 = arith.mulf %15, %14 : vector<128x128xf32>
    %17 = vector.extract_strided_slice %0 {offsets = [0, 0], sizes = [128, 128], strides = [1, 1]} : vector<128x256xf32> to vector<128x128xf32>
    %18 = arith.addf %16, %17 : vector<128x128xf32>
    %c0_12 = arith.constant 0 : index
    %c0_13 = arith.constant 0 : index
    %19 = vector.load %arg6[%c0_12, %c0_13] : memref<128x128xf32, #tpu.memory_space<vmem>>, vector<128x128xf32>
    tpu.vector_store %arg6[%c0_12, %c0_13], %18 {strides = array<i32>} : memref<128x128xf32, #tpu.memory_space<vmem>>, vector<128x128xf32>,
    return
  }
  func.func @transform_0(%arg0: i32) -> (i32, i32) {
    %c0_i32 = arith.constant 0 : i32
    %c0_i32_0 = arith.constant 0 : i32
    return %arg0, %c0_i32 : i32, i32
  }
  func.func @transform_1(%arg0: i32) -> (i32, i32) {
    %c0_i32 = arith.constant 0 : i32
    %c0_i32_0 = arith.constant 0 : i32
    %c0_i32_1 = arith.constant 0 : i32
    return %c0_i32, %c0_i32_0 : i32, i32
  }
  func.func @transform_2(%arg0: i32) -> (i32, i32) {
    %c0_i32 = arith.constant 0 : i32
    %c0_i32_0 = arith.constant 0 : i32
    %c0_i32_1 = arith.constant 0 : i32
    return %c0_i32, %c0_i32_0 : i32, i32
  }
  func.func @transform_3(%arg0: i32) -> (i32, i32) {
    %c0_i32 = arith.constant 0 : i32
    %c0_i32_0 = arith.constant 0 : i32
    %c0_i32_1 = arith.constant 0 : i32
    return %c0_i32, %c0_i32_0 : i32, i32
  }
  func.func @transform_4(%arg0: i32) -> (i32, i32) {
    %c0_i32 = arith.constant 0 : i32
    %c0_i32_0 = arith.constant 0 : i32
    %c0_i32_1 = arith.constant 0 : i32
    return %c0_i32, %c0_i32_0 : i32, i32
  }
  func.func @transform_5(%arg0: i32) -> (i32, i32) {
    %c0_i32 = arith.constant 0 : i32
    %c0_i32_0 = arith.constant 0 : i32
    return %arg0, %c0_i32 : i32, i32
  }
}

</mosaic_0001>

<bundles_post_ra>
// kernel: tpu_custom_call.1
= control target key start
LH: loop header
LB: loop body
LE: loop exit
PB: predicated region body
PF: predicated region fallthrough
CT: control target
= control target key end

     0   :  { %10 = vsyncpa [#allocation3], 0  ;;  %s1751_s0 = inlined_call_operand.hbm [shape: f32[256,256], index: 0, kind: input, shape index: {}]   ;;  %s1752_s1 = inlined_call_operand.hbm [shape: bf16[256,128], index: 1, kind: input, shape index: {}]   ;;  %s1753_s2 = inlined_call_operand.vmem [shape: f32[1,128], index: 2, kind: input, shape index: {}]   ;;  %s1754_s3 = inlined_call_operand.hbm [shape: bf16[128,128], index: 3, kind: input, shape index: {}]   ;;  %s1755_s4 = inlined_call_operand.vmem [shape: f32[1,128], index: 4, kind: input, shape index: {}]   ;;  %s1756_s5 = inlined_call_operand.hbm [shape: f32[256,128], index: 5, kind: output, shape index: {}]  }
   0x1   :  { %12 = vsyncpa [#allocation3 + $0x1], 0 }
   0x2   :  { %13 = vsyncpa [#allocation6], 0 }
   0x3   :  { %14 = vsyncpa [#allocation4], 0 }
   0x4   :  { %16 = vsyncpa [#allocation4 + $0x1], 0  ;;  %s1357_s18 = smov 0   ;;  %s1359_s19 = smov 0  }
   0x5   :  { %s1361_s20 = smov 0   ;;  %s1363_s21 = smov 0  }
   0x6 LB: > { %s1378_s22 = sadd.s32 4294967295, %s1315_s21   ;;  %s902_s23 = sadd.s32 4294967294, %s1315_s21   ;;  %s1315_s21 = sphi %s1363_s21, %s1776_s21   ;;  %s1311_s20 = sphi %s1361_s20, %s1775_s20   ;;  %s1307_s19 = sphi %s1359_s19, %s1774_s19   ;;  %s1303_s18 = sphi %s1357_s18, %s1773_s18  }
   0x7   : > { %p42_p0 = scmp.ne.s32.totalorder %s1307_s19, %s1303_s18  ;;  %p1757_p1 = scmp.eq.s32.totalorder %s1378_s22, 0 }
   0x8   : > { %p156_p3 = scmp.eq.s32.totalorder %s902_s23, 1  ;;  %p903_p5 = scmp.ge.s32.totalorder %s1315_s21, 1 }
   0x9   : > { %p1387_p4 = por %p1757_p1, %p42_p0  ;;  %p163_p7 = scmp.lt.s32.totalorder %s1315_s21, 3 }
   0xa   : > { %p1392_p6 = por %p156_p3, %p42_p0  ;;  %s1317_s27 = smov [#allocation5]  }
   0xb   : > { %s1760_s24 = scalar_select %p1387_p4, 1, 0 }
   0xc   : > { %s1761_s25 = scalar_select %p1392_p6, 1, 0 }
   0xd   : > { %p1397_p8 = pnand %p903_p5, %p163_p7  ;;  %s175_s28 = sshll.u32 %s1317_s27, 4  ;;  %s1401_s28 = int_to_ptr.vmem [resolvable:$true] %s175_s28 }
   0xe   : > { %s1318_s30 = smov [#allocation7]   ;;  %s1159_s9 = scalar_lea.hbm %s1752_s1, 2048 }
   0xf   : > { %p1074_p9 = pneg %p1397_p8  ;;  %s191_s6 = sshll.u32 %s1318_s30, 4  ;;  %s1412_s6 = int_to_ptr.vmem [resolvable:$true] %s191_s6 }
  0x10   : > { %p1160_p12 = scmp.ne.s32.totalorder %s1752_s1, %s1159_s9  ;;  %p1166_p5 = scmp.lt.u32.totalorder %s1159_s9, %s1752_s1 }
  0x11   : > { %p1408_p11 = pnand %p1074_p9, %p1757_p1 }
  0x13   : > { %p1161_p13 = pneg %p1408_p11 }
  0x15   : > { %p1162_p0 = pnand %p1161_p13, %p1160_p12 }
  0x17   : > { %p1163_p3 = pneg %p1162_p0 }
  0x19   : > { %p1168_p7 = pnand %p1166_p5, %p1163_p3 }
  0x1b   : > { %1171 = shalt.err (!%p1168_p7)
}
  0x1c   : > { %s1172_s14 = scalar_lea.vmem %s1401_s28, 2048  ;;  %p1180_p2 = scmp.lt.s32.totalorder %s1401_s28, %s1401_s28 }
  0x1d   : > { %p1173_p9 = scmp.ne.s32.totalorder %s1401_s28, %s1172_s14  ;;  %p1181_p12 = scmp.lt.s32.totalorder %s1172_s14, %s1172_s14 }
  0x1f   : > { %p1175_p10 = pnand %p1173_p9, %p1161_p13  ;;  %p1182_p0 = por %p1181_p12, %p1180_p2 }
  0x21   : > { %p1176_p1 = pneg %p1175_p10 }
  0x23   : > { %p1183_p6 = pnand %p1182_p0, %p1176_p1 }
  0x25   : > { %1186 = shalt.err (!%p1183_p6)
}
  0x26   : > { %s1319_s15 = smov 64   ;;  %s1320_s16 = smov 4  }
  0x27   : > { %1077 = dma.hbm_to_vmem [thread:$0]  (!%p1408_p11), %s1752_s1, 2048, %s1401_s28, [#allocation6], %s1319_s15, %s1319_s15, %s1320_s16  }
  0x28   : > { %s1187_s7 = scalar_lea.hbm %s1754_s3, 1024 }
  0x29   : > { %p1188_p2 = scmp.ne.s32.totalorder %s1754_s3, %s1187_s7  ;;  %p1194_p10 = scmp.lt.u32.totalorder %s1187_s7, %s1754_s3 }
  0x2b   : > { %p1190_p1 = pnand %p1188_p2, %p1161_p13 }
  0x2d   : > { %p1191_p6 = pneg %p1190_p1 }
  0x2f   : > { %p1196_p3 = pnand %p1194_p10, %p1191_p6 }
  0x31   : > { %1199 = shalt.err (!%p1196_p3)
}
  0x32   : > { %s1200_s28 = scalar_lea.vmem %s1412_s6, 1024  ;;  %p1208_p12 = scmp.lt.s32.totalorder %s1412_s6, %s1412_s6 }
  0x33   : > { %p1201_p5 = scmp.ne.s32.totalorder %s1412_s6, %s1200_s28  ;;  %p1209_p0 = scmp.lt.s32.totalorder %s1200_s28, %s1200_s28 }
  0x35   : > { %p1203_p7 = pnand %p1201_p5, %p1161_p13  ;;  %p1210_p2 = por %p1209_p0, %p1208_p12 }
  0x37   : > { %p1204_p9 = pneg %p1203_p7 }
  0x39   : > { %p1211_p1 = pnand %p1210_p2, %p1204_p9 }
  0x3b   : > { %1214 = shalt.err (!%p1211_p1)
}
  0x3c   : > { %1080 = dma.hbm_to_vmem [thread:$0]  (!%p1408_p11), %s1754_s3, 1024, %s1412_s6, [#allocation6], %s1319_s15, %s1319_s15, %s1320_s16  }
  0x3d   : > { %s1467_s14 = sadd.s32 1, %s1315_s21   ;;  %s29_s29 = sadd.s32 1, %s1311_s20 }
  0x3e   : > { %s26_s17 = ssub.s32 %s1315_s21, %s1467_s14  ;;  %p36_p13 = scmp.ne.s32.totalorder %s1311_s20, %s1307_s19 }
  0x3f   : > { %p27_p6 = scmp.eq.s32.totalorder %s26_s17, 0  ;;  %p37_p10 = scmp.eq.s32.totalorder %s1315_s21, 0 }
  0x40   : > { %p1764_p3 = scmp.eq.s32.totalorder %s1378_s22, 1  ;;  %p1091_p7 = scmp.lt.s32.totalorder %s1315_s21, 2 }
  0x41   : > { %s1483_s27 = scalar_select %p27_p6, %s1311_s20, %s29_s29  }
  0x42   : > { %p1477_p5 = por %p1764_p3, %p36_p13  ;;  %p38_p9 = por %p37_p10, %p36_p13 }
  0x43   : > { %s208_s30 = sand.u32 1, %s1311_s20   ;;  %s948_s6 = sshll.u32 %s1315_s21, 12 }
  0x44   : > { %s1765_s23 = scalar_select %p1477_p5, 1, 0 }
  0x45   : > { %s907_s7 = sshll.u32 %s208_s30, 8  ;;  %s1490_s8 = scalar_lea.hbm %s1751_s0, %s948_s6 }
  0x46   : > { %s212_s9 = scalar_lea.vmem [#allocation2], %s907_s7  ;;  %p1494_p11 = pnand %p1091_p7, %p38_p9 }
  0x47   : > { %s220_s10 = sshll.u32 %s212_s9, 4  ;;  %s1498_s28 = scalar_lea.sflag [#allocation3], %s208_s30  ;;  %s1492_s10 = int_to_ptr.vmem [resolvable:$true] %s220_s10 }
  0x48   : > { %s1215_s12 = scalar_lea.hbm %s1490_s8, 4096  ;;  %p1217_p0 = pneg %p1494_p11 }
  0x49   : > { %p1216_p12 = scmp.ne.s32.totalorder %s1490_s8, %s1215_s12  ;;  %s1220_s17 = scalar_lea.hbm %s1751_s0, 8192 }
  0x4a   : > { %p1221_p13 = scmp.lt.u32.totalorder %s1490_s8, %s1751_s0  ;;  %p1222_p6 = scmp.lt.u32.totalorder %s1220_s17, %s1215_s12 }
  0x4b   : > { %p1218_p2 = pnand %p1217_p0, %p1216_p12  ;;  %p1224_p3 = scmp.lt.u32.totalorder %s1215_s12, %s1490_s8 }
  0x4c   : > { %p1223_p10 = por %p1222_p6, %p1221_p13 }
  0x4d   : > { %p1219_p1 = pneg %p1218_p2 }
  0x4e   : > { %p1225_p7 = por %p1224_p3, %p1223_p10 }
  0x50   : > { %p1226_p9 = pnand %p1225_p7, %p1219_p1 }
  0x52   : > { %1229 = shalt.err (!%p1226_p9)
}
  0x53   : > { %s1230_s30 = scalar_lea.vmem %s1492_s10, 4096  ;;  %s1321_s15 = smov [#allocation2]  }
  0x54   : > { %p1231_p12 = scmp.ne.s32.totalorder %s1492_s10, %s1230_s30  ;;  %s1235_s16 = sshll.u32 %s1321_s15, 4  ;;  %s1236_s16 = int_to_ptr.vmem [resolvable:$false] %s1235_s16 }
  0x55   : > { %s1237_s9 = scalar_lea.vmem %s1236_s16, 8192  ;;  %p1238_p4 = scmp.lt.s32.totalorder %s1492_s10, %s1236_s16 }
  0x56   : > { %p1233_p2 = pnand %p1231_p12, %p1217_p0  ;;  %p1239_p13 = scmp.lt.s32.totalorder %s1237_s9, %s1230_s30 }
  0x58   : > { %p1234_p5 = pneg %p1233_p2  ;;  %p1240_p6 = por %p1239_p13, %p1238_p4 }
  0x5a   : > { %p1241_p10 = pnand %p1240_p6, %p1234_p5 }
  0x5c   : > { %1244 = shalt.err (!%p1241_p10)
}
  0x5d   : > { %s1322_s12 = smov 256   ;;  %s1323_s13 = smov 16  }
  0x5e   : > { %1084 = dma.hbm_to_vmem [thread:$0]  (!%p1494_p11), %s1490_s8, 4096, %s1492_s10, %s1498_s28, %s1322_s12, %s1322_s12, %s1323_s13  }
  0x5f   : > { %232 = sbr.rel (%p1397_p8) target bundleno = 654 (0x28e), region = 40  ;;  %s1529_s29 = sand.u32 (!%p1397_p8), 1, %s1307_s19  }
  0x60   : > { %s912_s17 = sshll.u32 (!%p1397_p8), %s1529_s29, 8  ;;  %s235_s7 = scalar_lea.sflag (!%p1397_p8), [#allocation3], %s1529_s29 }
  0x61   : > { %s1533_s6 = scalar_lea.vmem (!%p1397_p8), [#allocation2], %s912_s17  ;;  %p1767_p4 = scmp.ne.s32.totalorder (!%p1397_p8), %s1760_s24, 0 }
  0x66   : > { %1290 = dma.done.wait (%p1767_p4), %s235_s7, 4096  }
  0x67   : > { %1292 = vsyncadd (%p1767_p4), %s235_s7, 4294963200  ;;  %p1768_p5 = scmp.eq.s32.totalorder %s1378_s22, 0 }
  0x69   : > { %1294 = dma.done.wait (%p1768_p5), [#allocation6], 3072   ;;  %p1769_p8 = pmov %p1768_p5 }
  0x6a   : > { %v1135_v0 = vld [vmem:[#allocation5 + $0x40] sm:$0xff]   ;;  %v1137_v2 = vld [vmem:[#allocation5 + $0x48] sm:$0xff]   ;;  %v1139_v4 = vld [vmem:[#allocation5 + $0x50] sm:$0xff]   ;;  %s915_s11 = sshll.u32 %s1529_s29, 7  ;;  %s949_s30 = sshll.u32 %s1378_s22, 11 }
  0x6b   : > { %1296 = vsyncadd (%p1769_p8), [#allocation6], 4294964224  ;;  %v1136_v1 = vld [vmem:[#allocation5] sm:$0xff]   ;;  %950 = vmatprep.subr.bf16.mxu0 %v1135_v0  ;;  %v1138_v3 = vld [vmem:[#allocation5 + $0x8] sm:$0xff]   ;;  %s1656_s28 = scalar_lea.vmem [#allocation8], %s915_s11  ;;  %s1701_s12 = scalar_lea.hbm %s1756_s5, %s949_s30 }
  0x6c   : > { %951 = vmatpush3.bf16.msra.mxu0 %v1136_v1  ;;  %v1140_v5 = vld [vmem:[#allocation5 + $0x10] sm:$0xff]   ;;  %v1141_v6 = vld [vmem:[#allocation5 + $0x58] sm:$0xff]   ;;  %v1143_v8 = vld [vmem:[#allocation5 + $0x60] sm:$0xff]   ;;  %s810_s15 = sshll.u32 %s1656_s28, 4  ;;  %s797_s22 = scalar_lea.sflag [#allocation4], %s1529_s29  ;;  %s1703_s15 = int_to_ptr.vmem [resolvable:$true] %s810_s15 }
  0x6d   : > { %952 = vmatprep.subr.bf16.mxu0 %v1137_v2  ;;  %v1142_v7 = vld [vmem:[#allocation5 + $0x18] sm:$0xff]   ;;  %v1144_v9 = vld [vmem:[#allocation5 + $0x20] sm:$0xff]   ;;  %v1145_v10 = vld [vmem:[#allocation5 + $0x68] sm:$0xff]   ;;  %s1245_s13 = scalar_lea.vmem %s1703_s15, 2048  ;;  %p1770_p0 = scmp.ne.s32.totalorder %s1765_s23, 0 }
  0x6e   : > { %v277_v11 = vld [vmem:[%s1533_s6 + $0x8] sm:$0xff]  ;;  %v279_v12 = vld [vmem:[%s1533_s6 + $0x18] sm:$0xff]  ;;  %v1147_v15 = vld [vmem:[#allocation5 + $0x70] sm:$0xff]   ;;  %p1246_p11 = scmp.ne.s32.totalorder %s1703_s15, %s1245_s13  ;;  %s1324_s17 = smov [#allocation8]  }
  0x6f   : > { %v309_v13 = vpack.c.bf16 %v279_v12, %v277_v11  ;;  %v1146_v14 = vld [vmem:[#allocation5 + $0x28] sm:$0xff]   ;;  %v1148_v16 = vld [vmem:[#allocation5 + $0x30] sm:$0xff]   ;;  %v1149_v17 = vld [vmem:[#allocation5 + $0x78] sm:$0xff]   ;;  %s1249_s7 = sshll.u32 %s1324_s17, 4  ;;  %s1250_s7 = int_to_ptr.vmem [resolvable:$false] %s1249_s7 }
  0x70   : > { %953 = vmatpush3.bf16.msra.mxu0 %v1138_v3  ;;  %v1150_v18 = vld [vmem:[#allocation5 + $0x38] sm:$0xff]   ;;  %v1546_v19 = vld [vmem:[%s1533_s6] sm:$0xff]  ;;  %v1549_v20 = vld [vmem:[%s1533_s6 + $0x10] sm:$0xff]  ;;  %p1247_p1 = pnand %p1246_p11, %p1770_p0  ;;  %p1252_p7 = scmp.lt.s32.totalorder %s1703_s15, %s1250_s7 }
  0x71   : > { %954 = vmatprep.subr.bf16.mxu0 %v1139_v4  ;;  %491 = vmatprep.mubr.bf16.mxu0 %v309_v13  ;;  %v281_v21 = vld [vmem:[%s1533_s6 + $0x28] sm:$0xff]  ;;  %v283_v22 = vld [vmem:[%s1533_s6 + $0x38] sm:$0xff]  ;;  %v1151_v23 = vld [vmem:[#allocation7] sm:$0xff]   ;;  %v308_v26 = vpack.c.bf16 %v1549_v20, %v1546_v19 }
  0x72   : > { %v1152_v24 = vld [vmem:[#allocation7 + $0x8] sm:$0xff]   ;;  %1030 = vmatprep.subr.bf16.mxu1 %v1151_v23  ;;  %v1153_v25 = vld [vmem:[#allocation7 + $0x10] sm:$0xff]   ;;  %v311_v27 = vpack.c.bf16 %v283_v22, %v281_v21  ;;  %v1556_v28 = vld [vmem:[%s1533_s6 + $0x20] sm:$0xff]  ;;  %p1248_p3 = pneg %p1247_p1 }
  0x73   : > { %1031 = vmatpush3.bf16.msra.mxu1 %v1151_v23  ;;  %v1559_v29 = vld [vmem:[%s1533_s6 + $0x30] sm:$0xff]  ;;  %v285_v30 = vld [vmem:[%s1533_s6 + $0x48] sm:$0xff]  ;;  %v287_v31 = vld [vmem:[%s1533_s6 + $0x58] sm:$0xff] }
  0x74   : > { %955 = vmatpush3.bf16.msra.mxu0 %v1140_v5  ;;  %1032 = vmatprep.subr.bf16.mxu1 %v1152_v24  ;;  %v310_v32 = vpack.c.bf16 %v1559_v29, %v1556_v28  ;;  %v313_v33 = vpack.c.bf16 %v287_v31, %v285_v30  ;;  %v1566_v34 = vld [vmem:[%s1533_s6 + $0x40] sm:$0xff]  ;;  %v1569_v35 = vld [vmem:[%s1533_s6 + $0x50] sm:$0xff]  ;;  %v289_v36 = vld [vmem:[%s1533_s6 + $0x68] sm:$0xff] }
  0x75   : > { %956 = vmatprep.subr.bf16.mxu0 %v1141_v6  ;;  %v291_v37 = vld [vmem:[%s1533_s6 + $0x78] sm:$0xff]  ;;  %v312_v38 = vpack.c.bf16 %v1569_v35, %v1566_v34  ;;  %v1576_v40 = vld [vmem:[%s1533_s6 + $0x60] sm:$0xff]  ;;  %v1579_v41 = vld [vmem:[%s1533_s6 + $0x70] sm:$0xff] }
  0x76   : > { %v315_v39 = vpack.c.bf16 %v291_v37, %v289_v36  ;;  %v293_v42 = vld [vmem:[%s1533_s6 + $0x88] sm:$0xff]  ;;  %v295_v43 = vld [vmem:[%s1533_s6 + $0x98] sm:$0xff]  ;;  %v314_v44 = vpack.c.bf16 %v1579_v41, %v1576_v40  ;;  %v1586_v46 = vld [vmem:[%s1533_s6 + $0x80] sm:$0xff] }
  0x77   : > { %1033 = vmatpush3.bf16.msra.mxu1 %v1152_v24  ;;  %v317_v45 = vpack.c.bf16 %v295_v43, %v293_v42  ;;  %v1589_v47 = vld [vmem:[%s1533_s6 + $0x90] sm:$0xff]  ;;  %v297_v48 = vld [vmem:[%s1533_s6 + $0xa8] sm:$0xff]  ;;  %v299_v49 = vld [vmem:[%s1533_s6 + $0xb8] sm:$0xff] }
  0x78   : > { %957 = vmatpush3.bf16.msra.mxu0 %v1142_v7  ;;  %1034 = vmatprep.subr.bf16.mxu1 %v1153_v25  ;;  %v316_v50 = vpack.c.bf16 %v1589_v47, %v1586_v46  ;;  %v319_v51 = vpack.c.bf16 %v299_v49, %v297_v48  ;;  %v1596_v52 = vld [vmem:[%s1533_s6 + $0xa0] sm:$0xff]  ;;  %v1599_v53 = vld [vmem:[%s1533_s6 + $0xb0] sm:$0xff]  ;;  %v301_v54 = vld [vmem:[%s1533_s6 + $0xc8] sm:$0xff] }
  0x79   : > { %958 = vmatprep.subr.bf16.mxu0 %v1143_v8  ;;  %v303_v55 = vld [vmem:[%s1533_s6 + $0xd8] sm:$0xff]  ;;  %v318_v56 = vpack.c.bf16 %v1599_v53, %v1596_v52  ;;  %v1606_v58 = vld [vmem:[%s1533_s6 + $0xc0] sm:$0xff]  ;;  %v1609_v59 = vld [vmem:[%s1533_s6 + $0xd0] sm:$0xff] }
  0x7a   : > { %v321_v57 = vpack.c.bf16 %v303_v55, %v301_v54  ;;  %v305_v60 = vld [vmem:[%s1533_s6 + $0xe8] sm:$0xff]  ;;  %v307_v61 = vld [vmem:[%s1533_s6 + $0xf8] sm:$0xff]  ;;  %v320_v62 = vpack.c.bf16 %v1609_v59, %v1606_v58  ;;  %v1616_v0 = vld [vmem:[%s1533_s6 + $0xe0] sm:$0xff] }
  0x7b   : > { %1035 = vmatpush3.bf16.msra.mxu1 %v1153_v25  ;;  %v323_v63 = vpack.c.bf16 %v307_v61, %v305_v60  ;;  %v1619_v1 = vld [vmem:[%s1533_s6 + $0xf0] sm:$0xff]  ;;  %v1154_v3 = vld [vmem:[#allocation7 + $0x18] sm:$0xff]   ;;  %v1155_v4 = vld [vmem:[#allocation7 + $0x20] sm:$0xff]   ;;  %s1251_s6 = scalar_lea.vmem %s1250_s7, 4096 }
  0x7c   : > { %959 = vmatpush3.bf16.msra.mxu0 %v1144_v9  ;;  %v322_v2 = vpack.c.bf16 %v1619_v1, %v1616_v0  ;;  %1036 = vmatprep.subr.bf16.mxu1 %v1154_v3  ;;  %v1156_v5 = vld [vmem:[#allocation7 + $0x28] sm:$0xff]   ;;  %v1157_v6 = vld [vmem:[#allocation7 + $0x30] sm:$0xff]   ;;  %v1158_v7 = vld [vmem:[#allocation7 + $0x38] sm:$0xff]   ;;  %p1253_p9 = scmp.lt.s32.totalorder %s1251_s6, %s1245_s13 }
  0x7d   : > { %960 = vmatprep.subr.bf16.mxu0 %v1145_v10  ;;  %v1626_v10 = vld [vmem:[%s1753_s2] ss:$0 sm:$0xff] }
  0x7e   : > { %p1254_p12 = por %p1253_p9, %p1252_p7 }
  0x7f   : > { %1037 = vmatpush3.bf16.msra.mxu1 %v1154_v3 }
  0x80   : > { %961 = vmatpush3.bf16.msra.mxu0 %v1146_v14  ;;  %1038 = vmatprep.subr.bf16.mxu1 %v1155_v4  ;;  %p1255_p2 = pnand %p1254_p12, %p1248_p3 }
  0x81   : > { %962 = vmatprep.subr.bf16.mxu0 %v1147_v15 }
  0x83   : > { %1039 = vmatpush3.bf16.msra.mxu1 %v1155_v4 }
  0x84   : > { %963 = vmatpush3.bf16.msra.mxu0 %v1148_v16  ;;  %1040 = vmatprep.subr.bf16.mxu1 %v1156_v5 }
  0x85   : > { %964 = vmatprep.subr.bf16.mxu0 %v1149_v17 }
  0x87   : > { %1041 = vmatpush3.bf16.msra.mxu1 %v1156_v5 }
  0x88   : > { %965 = vmatpush3.bf16.msra.mxu0 %v1150_v18  ;;  %1042 = vmatprep.subr.bf16.mxu1 %v1157_v6 }
  0x8b   : > { %492 = vmatmul.mubr.bf16.vlgmr.msra.gmra.mrb[0].mxu0 %v308_v26  ;;  %1043 = vmatpush3.bf16.msra.mxu1 %v1157_v6 }
  0x8c   : > { %499 = vmatprep.mubr.bf16.mxu0 %v311_v27  ;;  %1044 = vmatprep.subr.bf16.mxu1 %v1158_v7 }
  0x8f   : > { %1045 = vmatpush3.bf16.msra.mxu1 %v1158_v7 }
  0x93   : > { %500 = vmatmul.mubr.bf16.gmra.mrb[4].mxu0 %v310_v32 }
  0x94   : > { %507 = vmatprep.mubr.bf16.mxu0 %v313_v33 }
  0x9b   : > { %508 = vmatmul.mubr.bf16.gmra.mrb[8].mxu0 %v312_v38 }
  0x9c   : > { %515 = vmatprep.mubr.bf16.mxu0 %v315_v39 }
  0xa3   : > { %516 = vmatmul.mubr.bf16.gmra.mrb[12].mxu0 %v314_v44 }
  0xa4   : > { %523 = vmatprep.mubr.bf16.mxu0 %v317_v45 }
  0xab   : > { %524 = vmatmul.mubr.bf16.gmra.mrb[16].mxu0 %v316_v50 }
  0xac   : > { %531 = vmatprep.mubr.bf16.mxu0 %v319_v51 }
  0xb3   : > { %532 = vmatmul.mubr.bf16.gmra.mrb[20].mxu0 %v318_v56 }
  0xb4   : > { %539 = vmatprep.mubr.bf16.mxu0 %v321_v57 }
  0xbb   : > { %540 = vmatmul.mubr.bf16.gmra.mrb[24].mxu0 %v320_v62 }
  0xbc   : > { %547 = vmatprep.mubr.bf16.mxu0 %v323_v63 }
  0xc3   : > { %548 = vmatmul.mubr.bf16.gmra.mrb[28].mxu0 %v322_v2 }
 0x15e   : > { %v966_v8 = vpop.f32.mrb[0].mxu0 }
 0x15f   : > { %v967_v9 = vpop.f32.mrb[1].mxu0 }
 0x160   : > { %v968_v11 = vadd.f32 %v967_v9, %v966_v8  ;;  %v969_v12 = vpop.f32.mrb[2].mxu0 }
 0x161   : > { %v970_v13 = vpop.f32.mrb[3].mxu0 }
 0x162   : > { %v971_v14 = vadd.f32 %v970_v13, %v969_v12  ;;  %v494_v15 = vadd.f32 %v968_v11, %v1626_v10 }
 0x164   : > { %v497_v16 = vadd.f32 %v971_v14, %v1626_v10  ;;  %v556_v18 = vmax.f32 %v494_v15, 0.0 }
 0x166   : > { %v972_v17 = vpop.f32.mrb[4].mxu0  ;;  %v557_v21 = vmax.f32 %v497_v16, 0.0 }
 0x167   : > { %v973_v22 = vpop.f32.mrb[5].mxu0 }
 0x168   : > { %v974_v23 = vadd.f32 %v973_v22, %v972_v17  ;;  %v975_v24 = vpop.f32.mrb[6].mxu0  ;;  %v572_v25 = vpack.c.bf16 %v557_v21, %v556_v18 }
 0x169   : > { %v976_v26 = vpop.f32.mrb[7].mxu0 }
 0x16a   : > { %v502_v27 = vadd.f32 %v974_v23, %v1626_v10  ;;  %v977_v30 = vadd.f32 %v976_v26, %v975_v24  ;;  %1046 = vmatprep.mubr.bf16.mxu1 %v572_v25 }
 0x16c   : > { %v505_v31 = vadd.f32 %v977_v30, %v1626_v10  ;;  %v558_v32 = vmax.f32 %v502_v27, 0.0 }
 0x16e   : > { %v559_v33 = vmax.f32 %v505_v31, 0.0  ;;  %v978_v36 = vpop.f32.mrb[8].mxu0 }
 0x16f   : > { %v979_v37 = vpop.f32.mrb[9].mxu0 }
 0x170   : > { %v980_v38 = vadd.f32 %v979_v37, %v978_v36  ;;  %v981_v39 = vpop.f32.mrb[10].mxu0  ;;  %v573_v42 = vpack.c.bf16 %v559_v33, %v558_v32 }
 0x171   : > { %v982_v43 = vpop.f32.mrb[11].mxu0 }
 0x172   : > { %v510_v44 = vadd.f32 %v980_v38, %v1626_v10  ;;  %v983_v45 = vadd.f32 %v982_v43, %v981_v39  ;;  %1047 = vmatmul.mubr.bf16.vlgmr.msra.gmra.mrb[0].mxu1 %v573_v42 }
 0x174   : > { %v513_v48 = vadd.f32 %v983_v45, %v1626_v10  ;;  %v560_v49 = vmax.f32 %v510_v44, 0.0 }
 0x176   : > { %v561_v50 = vmax.f32 %v513_v48, 0.0  ;;  %v984_v51 = vpop.f32.mrb[12].mxu0 }
 0x177   : > { %v985_v54 = vpop.f32.mrb[13].mxu0 }
 0x178   : > { %v986_v55 = vadd.f32 %v985_v54, %v984_v51  ;;  %v987_v56 = vpop.f32.mrb[14].mxu0  ;;  %v574_v57 = vpack.c.bf16 %v561_v50, %v560_v49 }
 0x179   : > { %v988_v60 = vpop.f32.mrb[15].mxu0 }
 0x17a   : > { %v518_v61 = vadd.f32 %v986_v55, %v1626_v10  ;;  %v989_v62 = vadd.f32 %v988_v60, %v987_v56  ;;  %1050 = vmatprep.mubr.bf16.mxu1 %v574_v57 }
 0x17c   : > { %v521_v63 = vadd.f32 %v989_v62, %v1626_v10  ;;  %v562_v2 = vmax.f32 %v518_v61, 0.0 }
 0x17e   : > { %v563_v3 = vmax.f32 %v521_v63, 0.0  ;;  %v990_v4 = vpop.f32.mrb[16].mxu0 }
 0x17f   : > { %v991_v5 = vpop.f32.mrb[17].mxu0 }
 0x180   : > { %v992_v6 = vadd.f32 %v991_v5, %v990_v4  ;;  %v993_v7 = vpop.f32.mrb[18].mxu0  ;;  %v575_v8 = vpack.c.bf16 %v563_v3, %v562_v2  ;;  %v1647_v2 = vld [vmem:[%s1755_s4] ss:$0 sm:$0xff] }
 0x181   : > { %v994_v9 = vpop.f32.mrb[19].mxu0 }
 0x182   : > { %v526_v11 = vadd.f32 %v992_v6, %v1626_v10  ;;  %v995_v12 = vadd.f32 %v994_v9, %v993_v7  ;;  %1051 = vmatmul.mubr.bf16.gmra.mrb[4].mxu1 %v575_v8 }
 0x184   : > { %v529_v13 = vadd.f32 %v995_v12, %v1626_v10  ;;  %v564_v14 = vmax.f32 %v526_v11, 0.0 }
 0x186   : > { %v565_v15 = vmax.f32 %v529_v13, 0.0  ;;  %v996_v16 = vpop.f32.mrb[20].mxu0 }
 0x187   : > { %v997_v17 = vpop.f32.mrb[21].mxu0 }
 0x188   : > { %v998_v18 = vadd.f32 %v997_v17, %v996_v16  ;;  %v999_v21 = vpop.f32.mrb[22].mxu0  ;;  %v576_v22 = vpack.c.bf16 %v565_v15, %v564_v14 }
 0x189   : > { %v1000_v23 = vpop.f32.mrb[23].mxu0 }
 0x18a   : > { %v534_v24 = vadd.f32 %v998_v18, %v1626_v10  ;;  %v1001_v25 = vadd.f32 %v1000_v23, %v999_v21  ;;  %1054 = vmatprep.mubr.bf16.mxu1 %v576_v22 }
 0x18c   : > { %v537_v26 = vadd.f32 %v1001_v25, %v1626_v10  ;;  %v566_v27 = vmax.f32 %v534_v24, 0.0 }
 0x18e   : > { %v567_v30 = vmax.f32 %v537_v26, 0.0  ;;  %v1002_v31 = vpop.f32.mrb[24].mxu0 }
 0x18f   : > { %v1003_v32 = vpop.f32.mrb[25].mxu0 }
 0x190   : > { %v1004_v33 = vadd.f32 %v1003_v32, %v1002_v31  ;;  %v1005_v36 = vpop.f32.mrb[26].mxu0  ;;  %v577_v37 = vpack.c.bf16 %v567_v30, %v566_v27 }
 0x191   : > { %v1006_v38 = vpop.f32.mrb[27].mxu0 }
 0x192   : > { %v542_v39 = vadd.f32 %v1004_v33, %v1626_v10  ;;  %v1007_v42 = vadd.f32 %v1006_v38, %v1005_v36  ;;  %1055 = vmatmul.mubr.bf16.gmra.mrb[8].mxu1 %v577_v37 }
 0x194   : > { %v545_v43 = vadd.f32 %v1007_v42, %v1626_v10  ;;  %v568_v44 = vmax.f32 %v542_v39, 0.0 }
 0x196   : > { %v569_v45 = vmax.f32 %v545_v43, 0.0  ;;  %v1008_v48 = vpop.f32.mrb[28].mxu0 }
 0x197   : > { %v1009_v49 = vpop.f32.mrb[29].mxu0 }
 0x198   : > { %v1010_v50 = vadd.f32 %v1009_v49, %v1008_v48  ;;  %v1011_v51 = vpop.f32.mrb[30].mxu0  ;;  %v578_v54 = vpack.c.bf16 %v569_v45, %v568_v44 }
 0x199   : > { %v1012_v55 = vpop.f32.mrb[31].mxu0 }
 0x19a   : > { %v550_v56 = vadd.f32 %v1010_v50, %v1626_v10  ;;  %v1013_v57 = vadd.f32 %v1012_v55, %v1011_v51  ;;  %1058 = vmatprep.mubr.bf16.mxu1 %v578_v54 }
 0x19c   : > { %v553_v60 = vadd.f32 %v1013_v57, %v1626_v10  ;;  %v570_v61 = vmax.f32 %v550_v56, 0.0 }
 0x19e   : > { %v571_v62 = vmax.f32 %v553_v60, 0.0 }
 0x1a0   : > { %v579_v63 = vpack.c.bf16 %v571_v62, %v570_v61 }
 0x1a2   : > { %1059 = vmatmul.mubr.bf16.gmra.mrb[12].mxu1 %v579_v63 }
 0x245   : > { %v1048_v3 = vpop.f32.mrb[0].mxu1 }
 0x246   : > { %v694_v4 = vadd.f32 %v1048_v3, %v1647_v2  ;;  %v685_v5 = vpop.f32.mrb[1].mxu1 }
 0x247   : > { %v686_v6 = vadd.f32 %v1647_v2, %v685_v5  ;;  %v1049_v7 = vpop.f32.mrb[2].mxu1 }
 0x248   : > { %v750_v8 = vmul.f32 0.1, %v694_v4  ;;  %v697_v10 = vadd.f32 %v1049_v7, %v1647_v2  ;;  %v688_v9 = vpop.f32.mrb[3].mxu1 }
 0x249   : > { %v748_v11 = vmul.f32 0.1, %v686_v6  ;;  %v689_v12 = vadd.f32 %v1647_v2, %v688_v9 }
 0x24a   : > { %v766_v13 = vadd.f32 %v750_v8, %v1556_v28  ;;  %v751_v14 = vmul.f32 0.1, %v697_v10 }
 0x24b   : > { %v764_v15 = vadd.f32 %v748_v11, %v1546_v19  ;;  %v749_v16 = vmul.f32 0.1, %v689_v12 }
 0x24c   : > { %782 = vst [vmem:[%s1656_s28 + $0x10] sm:$0xff] %v766_v13  ;;  %v767_v17 = vadd.f32 %v751_v14, %v1559_v29 }
 0x24d   : > { %780 = vst [vmem:[%s1656_s28] sm:$0xff] %v764_v15  ;;  %v765_v18 = vadd.f32 %v749_v16, %v1549_v20 }
 0x24e   : > { %783 = vst [vmem:[%s1656_s28 + $0x18] sm:$0xff] %v767_v17 }
 0x24f   : > { %781 = vst [vmem:[%s1656_s28 + $0x8] sm:$0xff] %v765_v18 }
 0x255   : > { %v1052_v28 = vpop.f32.mrb[4].mxu1 }
 0x256   : > { %v710_v19 = vadd.f32 %v1052_v28, %v1647_v2  ;;  %v701_v21 = vpop.f32.mrb[5].mxu1 }
 0x257   : > { %v702_v22 = vadd.f32 %v1647_v2, %v701_v21  ;;  %v1053_v23 = vpop.f32.mrb[6].mxu1 }
 0x258   : > { %v754_v24 = vmul.f32 0.1, %v710_v19  ;;  %v713_v25 = vadd.f32 %v1053_v23, %v1647_v2  ;;  %v704_v29 = vpop.f32.mrb[7].mxu1 }
 0x259   : > { %v752_v26 = vmul.f32 0.1, %v702_v22  ;;  %v705_v20 = vadd.f32 %v1647_v2, %v704_v29 }
 0x25a   : > { %v770_v27 = vadd.f32 %v754_v24, %v1576_v40  ;;  %v755_v30 = vmul.f32 0.1, %v713_v25 }
 0x25b   : > { %v768_v31 = vadd.f32 %v752_v26, %v1566_v34  ;;  %v753_v32 = vmul.f32 0.1, %v705_v20 }
 0x25c   : > { %786 = vst [vmem:[%s1656_s28 + $0x30] sm:$0xff] %v770_v27  ;;  %v771_v33 = vadd.f32 %v755_v30, %v1579_v41 }
 0x25d   : > { %784 = vst [vmem:[%s1656_s28 + $0x20] sm:$0xff] %v768_v31  ;;  %v769_v36 = vadd.f32 %v753_v32, %v1569_v35 }
 0x25e   : > { %787 = vst [vmem:[%s1656_s28 + $0x38] sm:$0xff] %v771_v33 }
 0x25f   : > { %785 = vst [vmem:[%s1656_s28 + $0x28] sm:$0xff] %v769_v36 }
 0x265   : > { %v1056_v37 = vpop.f32.mrb[8].mxu1 }
 0x266   : > { %v726_v38 = vadd.f32 %v1056_v37, %v1647_v2  ;;  %v717_v39 = vpop.f32.mrb[9].mxu1 }
 0x267   : > { %v718_v40 = vadd.f32 %v1647_v2, %v717_v39  ;;  %v1057_v34 = vpop.f32.mrb[10].mxu1 }
 0x268   : > { %v758_v42 = vmul.f32 0.1, %v726_v38  ;;  %v729_v43 = vadd.f32 %v1057_v34, %v1647_v2  ;;  %v720_v41 = vpop.f32.mrb[11].mxu1 }
 0x269   : > { %v756_v44 = vmul.f32 0.1, %v718_v40  ;;  %v721_v35 = vadd.f32 %v1647_v2, %v720_v41 }
 0x26a   : > { %v774_v45 = vadd.f32 %v758_v42, %v1596_v52  ;;  %v759_v48 = vmul.f32 0.1, %v729_v43 }
 0x26b   : > { %v772_v49 = vadd.f32 %v756_v44, %v1586_v46  ;;  %v757_v50 = vmul.f32 0.1, %v721_v35 }
 0x26c   : > { %790 = vst [vmem:[%s1656_s28 + $0x50] sm:$0xff] %v774_v45  ;;  %v775_v51 = vadd.f32 %v759_v48, %v1599_v53 }
 0x26d   : > { %788 = vst [vmem:[%s1656_s28 + $0x40] sm:$0xff] %v772_v49  ;;  %v773_v54 = vadd.f32 %v757_v50, %v1589_v47 }
 0x26e   : > { %791 = vst [vmem:[%s1656_s28 + $0x58] sm:$0xff] %v775_v51 }
 0x26f   : > { %789 = vst [vmem:[%s1656_s28 + $0x48] sm:$0xff] %v773_v54 }
 0x275   : > { %v1060_v55 = vpop.f32.mrb[12].mxu1 }
 0x276   : > { %v742_v56 = vadd.f32 %v1060_v55, %v1647_v2  ;;  %v733_v57 = vpop.f32.mrb[13].mxu1 }
 0x277   : > { %v734_v52 = vadd.f32 %v1647_v2, %v733_v57  ;;  %v1061_v60 = vpop.f32.mrb[14].mxu1 }
 0x278   : > { %v762_v46 = vmul.f32 0.1, %v742_v56  ;;  %v745_v61 = vadd.f32 %v1061_v60, %v1647_v2  ;;  %v736_v53 = vpop.f32.mrb[15].mxu1 }
 0x279   : > { %v760_v62 = vmul.f32 0.1, %v734_v52  ;;  %v737_v47 = vadd.f32 %v1647_v2, %v736_v53 }
 0x27a   : > { %v778_v63 = vadd.f32 %v762_v46, %v1616_v0  ;;  %v763_v3 = vmul.f32 0.1, %v745_v61 }
 0x27b   : > { %v776_v4 = vadd.f32 %v760_v62, %v1606_v58  ;;  %v761_v5 = vmul.f32 0.1, %v737_v47 }
 0x27c   : > { %794 = vst [vmem:[%s1656_s28 + $0x70] sm:$0xff] %v778_v63  ;;  %v779_v6 = vadd.f32 %v763_v3, %v1619_v1 }
 0x27d   : > { %792 = vst [vmem:[%s1656_s28 + $0x60] sm:$0xff] %v776_v4  ;;  %v777_v0 = vadd.f32 %v761_v5, %v1609_v59 }
 0x27e   : > { %795 = vst [vmem:[%s1656_s28 + $0x78] sm:$0xff] %v779_v6 }
 0x27f   : > { %793 = vst [vmem:[%s1656_s28 + $0x68] sm:$0xff] %v777_v0 }
 0x280   : > { %1258 = shalt.err (!%p1255_p2)
}
 0x281   : > { %s1259_s24 = scalar_lea.hbm %s1701_s12, 2048  ;;  %s1263_s10 = scalar_lea.hbm %s1756_s5, 4096 }
 0x282   : > { %p1260_p13 = scmp.ne.s32.totalorder %s1701_s12, %s1259_s24  ;;  %p1264_p4 = scmp.lt.u32.totalorder %s1701_s12, %s1756_s5 }
 0x283   : > { %p1265_p5 = scmp.lt.u32.totalorder %s1263_s10, %s1259_s24  ;;  %p1267_p11 = scmp.lt.u32.totalorder %s1259_s24, %s1701_s12 }
 0x284   : > { %p1261_p6 = pnand %p1260_p13, %p1770_p0 }
 0x285   : > { %p1266_p8 = por %p1265_p5, %p1264_p4 }
 0x286   : > { %p1262_p10 = pneg %p1261_p6 }
 0x287   : > { %p1268_p1 = por %p1267_p11, %p1266_p8 }
 0x289   : > { %p1269_p3 = pnand %p1268_p1, %p1262_p10 }
 0x28b   : > { %1272 = shalt.err (!%p1269_p3)
}
 0x28c   : > { %s1325_s30 = smov 128   ;;  %s1326_s16 = smov 8  }
 0x28d   : > { %1072 = dma.vmem_to_hbm [thread:$0]  (%p1770_p0), %s1703_s15, 2048, %s1701_s12, %s797_s22, %s1325_s30, %s1325_s30, %s1326_s16  }
 0x28e PF: > { %s825_s9 = sand.u32 1, %s1303_s18   ;;  %p1771_p7 = scmp.ne.s32.totalorder %s1761_s25, 0 }
 0x28f   : > { %p1772_p9 = scmp.ge.s32.totalorder %s1315_s21, 2  ;;  %s826_s13 = scalar_lea.sflag [#allocation4], %s825_s9 }
 0x291   : > { %p1086_p12 = pnand %p1772_p9, %p1771_p7 }
 0x293   : > { %1298 = dma.done.wait (!%p1086_p12), %s826_s13, 2048  }
 0x294   : > { %1300 = vsyncadd (!%p1086_p12), %s826_s13, 4294965248  ;;  %p19_p2 = scmp.ge.s32.totalorder %s1467_s14, 4   ;;  %s1773_s18 = smov %s1307_s19 }
 0x295   : > { %s1774_s19 = smov %s1311_s20  ;;  %s1775_s20 = smov %s1483_s27 }
 0x296   : > { %s1776_s21 = smov %s1467_s14  ;;  %21 = sbr.rel (!%p19_p2) target bundleno = 6 (0x6), region = 93 }
 0x29d   :  { %831 = vsyncpa [#allocation3], 1 }
 0x29e   :  { %833 = vsyncpa [#allocation3 + $0x1], 1 }
 0x29f   :  { %834 = vsyncpa [#allocation6], 1 }
 0x2a0   :  { %835 = vsyncpa [#allocation4], 1 }
 0x2a1   :  { %837 = vsyncpa [#allocation4 + $0x1], 1 }

</bundles_post_ra>
